<compile_context>
chip_gen: v5e
topology: v5e:2x2
jax: 0.10.0
libtpu: 0.0.40
codegen_flags: <defaults>
</compile_context>

<pallas_src>
import functools

import numpy as np

import jax
import jax.numpy as jnp
from jax.experimental import pallas as pl
from jax.experimental.pallas import tpu as pltpu

EPS = 1e-5


# ----------------------------------------------------------------------------
# Pallas kernels
# ----------------------------------------------------------------------------
def _mm_kernel(x_ref, w_ref, b_ref, o_ref, *, relu):
    # y = x @ w + b   (BN scale already folded into w's columns)
    acc = jnp.dot(x_ref[...], w_ref[...], preferred_element_type=jnp.float32)
    y = acc + b_ref[...]
    if relu:
        y = jnp.maximum(y, 0.0)
    o_ref[...] = y.astype(o_ref.dtype)


def _affine_mm_kernel(x_ref, ps_ref, pb_ref, w_ref, b_ref, o_ref, *, relu):
    # prologue: relu(x * ps + pb)  (fused pre-activation BN+ReLU), then matmul
    t = x_ref[...].astype(jnp.float32) * ps_ref[...] + pb_ref[...]
    t = jnp.maximum(t, 0.0)
    acc = jnp.dot(t.astype(w_ref.dtype), w_ref[...],
                  preferred_element_type=jnp.float32)
    y = acc + b_ref[...]
    if relu:
        y = jnp.maximum(y, 0.0)
    o_ref[...] = y.astype(o_ref.dtype)


def _add_affine_mm_kernel(x_ref, x2_ref, ps_ref, pb_ref, w_ref, b_ref, o_ref,
                          *, relu):
    # prologue: relu((x + x2) * ps + pb), then matmul
    t = (x_ref[...].astype(jnp.float32) + x2_ref[...].astype(jnp.float32))
    t = t * ps_ref[...] + pb_ref[...]
    t = jnp.maximum(t, 0.0)
    acc = jnp.dot(t.astype(w_ref.dtype), w_ref[...],
                  preferred_element_type=jnp.float32)
    y = acc + b_ref[...]
    if relu:
        y = jnp.maximum(y, 0.0)
    o_ref[...] = y.astype(o_ref.dtype)


def _conv3x3_kernel(x_ref, w_ref, b_ref, o_ref, *, relu, hw, row_stride):
    # x_ref: (1, (H+2)*W, 3*Cin)  W-direction im2col of one H-padded image
    # w_ref: (3, 3*Cin, Cout)     per-ky weight slab, BN scale folded in
    # b_ref: (1, Cout) f32        folded BN shift
    # o_ref: (1, H*W, Cout)
    acc = jnp.dot(x_ref[0, 0:hw, :], w_ref[0],
                  preferred_element_type=jnp.float32)
    acc = acc + jnp.dot(x_ref[0, row_stride:row_stride + hw, :], w_ref[1],
                        preferred_element_type=jnp.float32)
    acc = acc + jnp.dot(x_ref[0, 2 * row_stride:2 * row_stride + hw, :],
                        w_ref[2], preferred_element_type=jnp.float32)
    y = acc + b_ref[...]
    if relu:
        y = jnp.maximum(y, 0.0)
    o_ref[0, :, :] = y.astype(o_ref.dtype)


# ----------------------------------------------------------------------------
# Pallas wrappers
# ----------------------------------------------------------------------------
def _pick_row_tile(m):
    for tm in (256, 128):
        if m % tm == 0:
            return tm
    if m <= 1024:
        return m           # single whole-array block (always a legal block)
    return 128             # large ragged M: pad rows up to a multiple of 128


def _fused_matmul(x2d, w, shift, *, relu, prologue=None, x2=None,
                  pscale=None, pshift=None):
    """y = [prologue](x) @ w + shift, optional ReLU, in one Pallas kernel.

    prologue: None | 'affine' (relu(x*ps+pb)) | 'add_affine' (relu((x+x2)*ps+pb))
    """
    m, k = x2d.shape
    cout = w.shape[1]
    tm = _pick_row_tile(m)
    mp = ((m + tm - 1) // tm) * tm
    if mp != m:
        x2d = jnp.pad(x2d, ((0, mp - m), (0, 0)))
        if x2 is not None:
            x2 = jnp.pad(x2, ((0, mp - m), (0, 0)))
    grid = (mp // tm,)

    w_b = w.astype(jnp.bfloat16)
    shift2 = shift.reshape(1, cout).astype(jnp.float32)

    row_spec = pl.BlockSpec((tm, k), lambda i: (i, 0))
    w_spec = pl.BlockSpec((k, cout), lambda i: (0, 0))
    bias_spec = pl.BlockSpec((1, cout), lambda i: (0, 0))
    chan_spec = pl.BlockSpec((1, k), lambda i: (0, 0))

    if prologue is None:
        kern = functools.partial(_mm_kernel, relu=relu)
        args = (x2d, w_b, shift2)
        in_specs = [row_spec, w_spec, bias_spec]
    elif prologue == "affine":
        kern = functools.partial(_affine_mm_kernel, relu=relu)
        args = (x2d, pscale.reshape(1, k).astype(jnp.float32),
                pshift.reshape(1, k).astype(jnp.float32), w_b, shift2)
        in_specs = [row_spec, chan_spec, chan_spec, w_spec, bias_spec]
    elif prologue == "add_affine":
        kern = functools.partial(_add_affine_mm_kernel, relu=relu)
        args = (x2d, x2, pscale.reshape(1, k).astype(jnp.float32),
                pshift.reshape(1, k).astype(jnp.float32), w_b, shift2)
        in_specs = [row_spec, row_spec, chan_spec, chan_spec, w_spec, bias_spec]
    else:
        raise ValueError(prologue)

    out = pl.pallas_call(
        kern,
        out_shape=jax.ShapeDtypeStruct((mp, cout), jnp.bfloat16),
        grid=grid,
        in_specs=in_specs,
        out_specs=pl.BlockSpec((tm, cout), lambda i: (i, 0)),
        compiler_params=pltpu.CompilerParams(dimension_semantics=("parallel",)),
    )(*args)
    return out[:m] if mp != m else out


# ----------------------------------------------------------------------------
# BN folding helpers (eval-mode running stats)
# ----------------------------------------------------------------------------
def fold_conv_bn(p):
    inv = p["gamma"] / jnp.sqrt(p["var"] + EPS)
    return inv, (p["b"] - p["mean"]) * inv + p["beta"]


def fold_bn(p):
    inv = p["gamma"] / jnp.sqrt(p["var"] + EPS)
    return inv, p["beta"] - p["mean"] * inv


def _folded_weight_1x1(p):
    scale, shift = fold_conv_bn(p)
    w2 = p["w"].reshape(p["w"].shape[0], p["w"].shape[1]).T       # (Cin, Cout)
    return (w2 * scale[None, :]).astype(jnp.bfloat16), shift.astype(jnp.float32)


# ----------------------------------------------------------------------------
# conv_bn_relu equivalents
# ----------------------------------------------------------------------------
def conv1x1_bn(x, p, relu, prologue=None, x2=None, pscale=None, pshift=None):
    n, h, w, c = x.shape
    wf, shift = _folded_weight_1x1(p)
    y = _fused_matmul(
        x.reshape(-1, c), wf, shift, relu=relu, prologue=prologue,
        x2=None if x2 is None else x2.reshape(-1, c),
        pscale=pscale, pshift=pshift)
    return y.reshape(n, h, w, -1)


def conv3x3_bn(x, p, relu):
    n, h, w, c = x.shape
    scale, shift = fold_conv_bn(p)
    # PyTorch weight (Cout, Cin, 3, 3) -> (ky, kx*Cin, Cout); fold BN scale.
    wt = jnp.transpose(p["w"], (2, 3, 1, 0)).reshape(3, 3 * c, -1)
    wt = (wt * scale[None, None, :]).astype(jnp.bfloat16)
    cout = wt.shape[-1]

    # Pad H and W by 1; im2col along W only (3x traffic instead of 9x). The
    # three ky row-taps are accumulated inside the kernel as separate MXU dots.
    xp = jnp.pad(x, ((0, 0), (1, 1), (1, 1), (0, 0)))
    xw = jnp.concatenate([xp[:, :, dx:dx + w, :] for dx in range(3)], axis=-1)
    xw = xw.reshape(n, (h + 2) * w, 3 * c)

    kern = functools.partial(_conv3x3_kernel, relu=relu, hw=h * w, row_stride=w)
    out = pl.pallas_call(
        kern,
        out_shape=jax.ShapeDtypeStruct((n, h * w, cout), jnp.bfloat16),
        grid=(n,),
        in_specs=[
            pl.BlockSpec((1, (h + 2) * w, 3 * c), lambda i: (i, 0, 0)),
            pl.BlockSpec((3, 3 * c, cout), lambda i: (0, 0, 0)),
            pl.BlockSpec((1, cout), lambda i: (0, 0)),
        ],
        out_specs=pl.BlockSpec((1, h * w, cout), lambda i: (i, 0, 0)),
        compiler_params=pltpu.CompilerParams(dimension_semantics=("parallel",)),
    )(xw, wt, shift.reshape(1, -1).astype(jnp.float32))
    return out.reshape(n, h, w, cout)


# ----------------------------------------------------------------------------
# JAX glue: gather-free fractional max-pool and matmul-form bilinear resize
# ----------------------------------------------------------------------------
def _pool_starts(inn, out, k=3):
    if out <= 1:
        return np.zeros((max(out, 1),), np.int64)
    idx = np.arange(out, dtype=np.float64)
    s = np.floor(idx * max(inn - k, 0) / (out - 1)).astype(np.int64)
    return np.clip(s, 0, max(inn - k, 0))


def frac_max_pool(x, hout, wout, k=3):
    # TODO(synk): nn.FractionalMaxPool2d samples pooling-region offsets
    # pseudo-randomly; this deterministic variant uses evenly spaced starts.
    n, h, w, c = x.shape
    hs = _pool_starts(h, hout, k)
    ws = _pool_starts(w, wout, k)
    xh = jnp.stack(
        [jnp.max(x[:, int(s):int(s) + k, :, :], axis=1) for s in hs], axis=1)
    return jnp.stack(
        [jnp.max(xh[:, :, int(s):int(s) + k, :], axis=2) for s in ws], axis=2)


def _interp_matrix(inn, out):
    if out == 1 or inn == 1:
        return jnp.zeros((out, inn), jnp.float32).at[:, 0].set(1.0)
    pos = jnp.arange(out, dtype=jnp.float32) * (inn - 1) / (out - 1)
    lo = jnp.floor(pos).astype(jnp.int32)
    hi = jnp.minimum(lo + 1, inn - 1)
    f = pos - lo.astype(jnp.float32)
    return (jax.nn.one_hot(lo, inn) * (1.0 - f)[:, None]
            + jax.nn.one_hot(hi, inn) * f[:, None])


def bilinear_resize(x, out_h, out_w):
    # F.interpolate(mode='bilinear', align_corners=True) as two dense
    # interpolation matmuls (MXU-friendly, no gathers).
    n, h, w, c = x.shape
    wy = _interp_matrix(h, out_h)                # (Hout, h)
    wx = _interp_matrix(w, out_w)                # (Wout, w)
    xf = x.astype(jnp.float32)
    t = jnp.einsum('Hh,nhwc->nHwc', wy, xf)
    out = jnp.einsum('Ww,nHwc->nHWc', wx, t)
    return out.astype(jnp.bfloat16)


# ----------------------------------------------------------------------------
# Parameter init (deterministic, synthetic; BN in eval/inference semantics)
# ----------------------------------------------------------------------------
def cbr_params(key, cin, cout, k):
    ks = jax.random.split(key, 6)
    return dict(
        w=0.1 * jax.random.normal(ks[0], (cout, cin, k, k), jnp.float32),
        b=0.1 * jax.random.normal(ks[1], (cout,), jnp.float32),
        gamma=1.0 + 0.1 * jax.random.normal(ks[2], (cout,), jnp.float32),
        beta=0.1 * jax.random.normal(ks[3], (cout,), jnp.float32),
        mean=0.1 * jax.random.normal(ks[4], (cout,), jnp.float32),
        var=1.0 + 0.1 * jnp.abs(jax.random.normal(ks[5], (cout,), jnp.float32)),
    )


def bn_params(key, c):
    ks = jax.random.split(key, 4)
    return dict(
        gamma=1.0 + 0.1 * jax.random.normal(ks[0], (c,), jnp.float32),
        beta=0.1 * jax.random.normal(ks[1], (c,), jnp.float32),
        mean=0.1 * jax.random.normal(ks[2], (c,), jnp.float32),
        var=1.0 + 0.1 * jnp.abs(jax.random.normal(ks[3], (c,), jnp.float32)),
    )


def init_params(key, in_ch, out_ch, cardinality, block_type):
    mid = out_ch // 2
    keys = iter(jax.random.split(key, 32))
    params = {}
    if block_type != "no_preact":
        params["pre_bn"] = bn_params(next(keys), in_ch)
    params["conv1"] = cbr_params(next(keys), in_ch, mid, 1)
    params["conv2"] = cbr_params(next(keys), mid, mid, 3)
    params["conv3"] = cbr_params(next(keys), mid, mid, 1)
    params["conv_top"] = cbr_params(next(keys), in_ch, mid, 1)
    params["pry"] = [
        dict(conv1=cbr_params(next(keys), mid, mid, 3),
             conv2=cbr_params(next(keys), mid, mid, 1))
        for _ in range(cardinality)
    ]
    params["bn"] = bn_params(next(keys), mid)
    params["conv_bot"] = cbr_params(next(keys), mid, mid, 1)
    params["conv_out"] = cbr_params(next(keys), mid, out_ch, 1)
    return params


# ----------------------------------------------------------------------------
# ConvBlock forward
# ----------------------------------------------------------------------------
def conv_block_forward(x_nchw, params, ori_shape, cardinality, block_type):
    x = jnp.transpose(x_nchw, (0, 2, 3, 1)).astype(jnp.bfloat16)  # NCHW->NHWC

    # ---- main branch: (preact BN+ReLU fused into conv1) -> conv2 -> conv3 ---
    if block_type != "no_preact":
        s, b = fold_bn(params["pre_bn"])
        t = conv1x1_bn(x, params["conv1"], relu=True,
                       prologue="affine", pscale=s, pshift=b)
    else:
        t = conv1x1_bn(x, params["conv1"], relu=True)
    t = conv3x3_bn(t, params["conv2"], relu=True)
    out_main = conv1x1_bn(t, params["conv3"], relu=False)

    # ---- pyramid branch ----------------------------------------------------
    top = conv1x1_bn(x, params["conv_top"], relu=False)
    h, w = top.shape[1], top.shape[2]

    def pyramid_level(i):
        ratio = 1.0 / (2 ** (i + 1))
        ph, pw = max(int(h * ratio), 1), max(int(w * ratio), 1)
        p = frac_max_pool(top, ph, pw)
        p = conv3x3_bn(p, params["pry"][i]["conv1"], relu=True)
        p = conv1x1_bn(p, params["pry"][i]["conv2"], relu=True)
        return bilinear_resize(p, ori_shape[0], ori_shape[1])

    # PyTorch semantics: out_pry = pyr[C-1] + pyr[0] for C > 1, else pyr[0]
    # (levels 1..C-2 never reach the output, so they are not computed).
    bn_s, bn_b = fold_bn(params["bn"])
    p0 = pyramid_level(0)
    if cardinality > 1:
        plast = pyramid_level(cardinality - 1)
        # fused: conv_bot(relu(bn(plast + p0)))
        out_pry = conv1x1_bn(plast, params["conv_bot"], relu=False,
                             prologue="add_affine", x2=p0,
                             pscale=bn_s, pshift=bn_b)
    else:
        # fused: conv_bot(relu(bn(p0)))
        out_pry = conv1x1_bn(p0, params["conv_bot"], relu=False,
                             prologue="affine", pscale=bn_s, pshift=bn_b)

    assert out_pry.shape == out_main.shape

    # fused: conv_out(relu(bn(out_pry + out_main)))  -- self.bn reused (eval)
    out = conv1x1_bn(out_main, params["conv_out"], relu=False,
                     prologue="add_affine", x2=out_pry,
                     pscale=bn_s, pshift=bn_b)
    return jnp.transpose(out, (0, 3, 1, 2)).astype(jnp.float32)   # NHWC->NCHW


# ----------------------------------------------------------------------------
if __name__ == "__main__":
    key = jax.random.PRNGKey(0)
    kx, kp = jax.random.split(key)

    in_ch, out_ch, cardinality = 4, 8, 2
    H = W = 16
    ori_shape = (H, W)
    block_type = "preact"   # anything != 'no_preact' exercises the preact path

    x = jax.random.normal(kx, (2, in_ch, H, W), jnp.float32)
    params = init_params(kp, in_ch, out_ch, cardinality, block_type)

    out = conv_block_forward(x, params, ori_shape, cardinality, block_type)
    out = jax.block_until_ready(out)
    assert out.shape == (2, out_ch, H, W), out.shape
    assert jnp.all(jnp.isfinite(out))
    print("KERNEL_OK")
</pallas_src>

<mosaic_0001>
module attributes {stable_mosaic.version = 11 : i64} {
  func.func @_affine_mm_kernel(%arg0: i32, %arg1: memref<256x4xbf16, #tpu.memory_space<vmem>>, %arg2: memref<1x4xf32, #tpu.memory_space<vmem>>, %arg3: memref<1x4xf32, #tpu.memory_space<vmem>>, %arg4: memref<4x4xbf16, #tpu.memory_space<vmem>>, %arg5: memref<1x4xf32, #tpu.memory_space<vmem>>, %arg6: memref<256x4xbf16, #tpu.memory_space<vmem>>) attributes {dimension_semantics = [#tpu.dimension_semantics<parallel>], iteration_bounds = array<i64: 2>, scalar_prefetch = 0 : i64, scratch_operands = 0 : i64, tpu.core_type = #tpu.core_type<tc>, window_params = [{transform_indices = @transform_0, window_bounds = array<i64: 256, 4>}, {pipeline_mode = #tpu.pipeline_mode<synchronous>, transform_indices = @transform_1, window_bounds = array<i64: 1, 4>}, {pipeline_mode = #tpu.pipeline_mode<synchronous>, transform_indices = @transform_2, window_bounds = array<i64: 1, 4>}, {pipeline_mode = #tpu.pipeline_mode<synchronous>, transform_indices = @transform_3, window_bounds = array<i64: 4, 4>}, {pipeline_mode = #tpu.pipeline_mode<synchronous>, transform_indices = @transform_4, window_bounds = array<i64: 1, 4>}, {transform_indices = @transform_5, window_bounds = array<i64: 256, 4>}]} {
    %c0 = arith.constant 0 : index
    %c0_0 = arith.constant 0 : index
    %0 = vector.load %arg1[%c0, %c0_0] : memref<256x4xbf16, #tpu.memory_space<vmem>>, vector<256x4xbf16>
    %1 = arith.extf %0 : vector<256x4xbf16> to vector<256x4xf32>
    %c0_1 = arith.constant 0 : index
    %c0_2 = arith.constant 0 : index
    %2 = vector.load %arg2[%c0_1, %c0_2] : memref<1x4xf32, #tpu.memory_space<vmem>>, vector<1x4xf32>
    %3 = vector.broadcast %2 : vector<1x4xf32> to vector<256x4xf32>
    %4 = arith.mulf %1, %3 : vector<256x4xf32>
    %c0_3 = arith.constant 0 : index
    %c0_4 = arith.constant 0 : index
    %5 = vector.load %arg3[%c0_3, %c0_4] : memref<1x4xf32, #tpu.memory_space<vmem>>, vector<1x4xf32>
    %6 = vector.broadcast %5 : vector<1x4xf32> to vector<256x4xf32>
    %7 = arith.addf %4, %6 : vector<256x4xf32>
    %cst = arith.constant 0.000000e+00 : f32
    %8 = vector.broadcast %cst : f32 to vector<256x4xf32>
    %9 = arith.maximumf %7, %8 : vector<256x4xf32>
    %10 = arith.truncf %9 : vector<256x4xf32> to vector<256x4xbf16>
    %c0_5 = arith.constant 0 : index
    %c0_6 = arith.constant 0 : index
    %11 = vector.load %arg4[%c0_5, %c0_6] : memref<4x4xbf16, #tpu.memory_space<vmem>>, vector<4x4xbf16>
    %cst_7 = arith.constant dense<0.000000e+00> : vector<256x4xf32>
    %12 = tpu.matmul %10, %11, %cst_7 {dimension_numbers = #tpu.dot_dimension_numbers<[1], [0], [0], [1], [0, 0, 1, 1], [], []>} : vector<256x4xbf16>, vector<4x4xbf16>, vector<256x4xf32> -> vector<256x4xf32>
    %c0_8 = arith.constant 0 : index
    %c0_9 = arith.constant 0 : index
    %13 = vector.load %arg5[%c0_8, %c0_9] : memref<1x4xf32, #tpu.memory_space<vmem>>, vector<1x4xf32>
    %14 = vector.broadcast %13 : vector<1x4xf32> to vector<256x4xf32>
    %15 = arith.addf %12, %14 : vector<256x4xf32>
    %cst_10 = arith.constant 0.000000e+00 : f32
    %16 = vector.broadcast %cst_10 : f32 to vector<256x4xf32>
    %17 = arith.maximumf %15, %16 : vector<256x4xf32>
    %18 = arith.truncf %17 : vector<256x4xf32> to vector<256x4xbf16>
    %c0_11 = arith.constant 0 : index
    %c0_12 = arith.constant 0 : index
    %19 = vector.load %arg6[%c0_11, %c0_12] : memref<256x4xbf16, #tpu.memory_space<vmem>>, vector<256x4xbf16>
    tpu.vector_store %arg6[%c0_11, %c0_12], %18 {strides = array<i32>} : memref<256x4xbf16, #tpu.memory_space<vmem>>, vector<256x4xbf16>,
    return
  }
  func.func @transform_0(%arg0: i32) -> (i32, i32) {
    %c0_i32 = arith.constant 0 : i32
    %c0_i32_0 = arith.constant 0 : i32
    return %arg0, %c0_i32 : i32, i32
  }
  func.func @transform_1(%arg0: i32) -> (i32, i32) {
    %c0_i32 = arith.constant 0 : i32
    %c0_i32_0 = arith.constant 0 : i32
    %c0_i32_1 = arith.constant 0 : i32
    return %c0_i32, %c0_i32_0 : i32, i32
  }
  func.func @transform_2(%arg0: i32) -> (i32, i32) {
    %c0_i32 = arith.constant 0 : i32
    %c0_i32_0 = arith.constant 0 : i32
    %c0_i32_1 = arith.constant 0 : i32
    return %c0_i32, %c0_i32_0 : i32, i32
  }
  func.func @transform_3(%arg0: i32) -> (i32, i32) {
    %c0_i32 = arith.constant 0 : i32
    %c0_i32_0 = arith.constant 0 : i32
    %c0_i32_1 = arith.constant 0 : i32
    return %c0_i32, %c0_i32_0 : i32, i32
  }
  func.func @transform_4(%arg0: i32) -> (i32, i32) {
    %c0_i32 = arith.constant 0 : i32
    %c0_i32_0 = arith.constant 0 : i32
    %c0_i32_1 = arith.constant 0 : i32
    return %c0_i32, %c0_i32_0 : i32, i32
  }
  func.func @transform_5(%arg0: i32) -> (i32, i32) {
    %c0_i32 = arith.constant 0 : i32
    %c0_i32_0 = arith.constant 0 : i32
    return %arg0, %c0_i32 : i32, i32
  }
}

</mosaic_0001>

<bundles_post_ra>
// kernel: tpu_custom_call.1
= control target key start
LH: loop header
LB: loop body
LE: loop exit
PB: predicated region body
PF: predicated region fallthrough
CT: control target
= control target key end

     0   :  { %s871_s18 = smov 0   ;;  %s1109_s0 = inlined_call_operand.vmem [shape: bf16[512,4], index: 0, kind: input, shape index: {}]   ;;  %s1110_s1 = inlined_call_operand.vmem [shape: f32[1,4], index: 1, kind: input, shape index: {}]   ;;  %s1111_s2 = inlined_call_operand.vmem [shape: f32[1,4], index: 2, kind: input, shape index: {}]   ;;  %s1112_s3 = inlined_call_operand.vmem [shape: bf16[4,4], index: 3, kind: input, shape index: {}]   ;;  %s1113_s4 = inlined_call_operand.vmem [shape: f32[1,4], index: 4, kind: input, shape index: {}]   ;;  %s1114_s5 = inlined_call_operand.vmem [shape: bf16[512,4], index: 5, kind: output, shape index: {}]  }
   0x1 LB: > { %s713_s19 = sadd.s32 4294967295, %s839_s18   ;;  %p717_p0 = scmp.ge.s32.totalorder %s839_s18, 1  ;;  %s839_s18 = sphi %s871_s18, %s15_s18  }
   0x2   : > { %p188_p1 = scmp.lt.s32.totalorder %s839_s18, 3 }
   0x4   : > { %p189_p2 = pnand %p717_p0, %p188_p1 }
   0x5   : > { %s718_s22 = sshll.u32 (!%p189_p2), %s713_s19, 5 }
   0x6   : > { %192 = sbr.rel (%p189_p2) target bundleno = 223 (0xdf), region = 40  ;;  %p217_p3 = scmp.lt.s32.totalorder (!%p189_p2), %s718_s22, 63 }
   0xb   : > { %v413_v0 = vld [vmem:[%s1112_s3] sm:$0x3]  ;;  %vm467_vm0 = vcmask 1041408   ;;  %s1116_s22 = smov (!%p217_p3, %s718_s22), 63  ;;  %vm418_vm1 = vcmask 31744   ;;  %vm624_vm2 = vcmask 27648  }
   0xc   : > { %v469_v1 = vsel %vm467_vm0, %v413_v0, 0  ;;  %s719_s23 = sshll.u32 %s1116_s22, 2  ;;  %v895_v2 = vld [vmem:[%s1110_s1] ss:$0 sm:$0xff] }
   0xd   : > { %478 = vmatpush.bf16.msra.mxu0 %v469_v1  ;;  %819 = vmatpush.bf16.msra.mxu1 %v469_v1  ;;  %s890_s26 = scalar_lea.vmem %s1109_s0, %s719_s23  ;;  %v903_v8 = vld [vmem:[%s1111_s2] ss:$0 sm:$0xff]  ;;  %s1010_s10 = scalar_lea.vmem %s1114_s5, %s719_s23 }
   0xe   : > { %820 = vmatpush.bf16.msra.mxu2 %v469_v1  ;;  %821 = vmatpush.bf16.msra.mxu3 %v469_v1  ;;  %v741_v3 = vld [vmem:[%s890_s26] sm:$0xff]   ;;  %v804_v32 = vld [vmem:[%s890_s26 + $0x8] sm:$0xff]  }
   0xf   : > { %v807_v4 = vld [vmem:[%s890_s26 + $0x20] sm:$0xff]   ;;  %v742_v6 = vunpack.c.l.bf16 %v741_v3  ;;  %v743_v7 = vunpack.c.h.bf16 %v741_v3  ;;  %v808_v37 = vld [vmem:[%s890_s26 + $0x28] sm:$0xff]   ;;  %v746_v45 = vunpack.c.l.bf16 %v804_v32  ;;  %v747_v46 = vunpack.c.h.bf16 %v804_v32 }
  0x10   : > { %v811_v5 = vld [vmem:[%s890_s26 + $0x40] sm:$0xff]   ;;  %v758_v9 = vunpack.c.l.bf16 %v807_v4  ;;  %v759_v10 = vunpack.c.h.bf16 %v807_v4  ;;  %v812_v42 = vld [vmem:[%s890_s26 + $0x48] sm:$0xff]   ;;  %v762_v50 = vunpack.c.l.bf16 %v808_v37  ;;  %v763_v51 = vunpack.c.h.bf16 %v808_v37 }
  0x11   : > { %v815_v11 = vld [vmem:[%s890_s26 + $0x60] sm:$0xff]   ;;  %v774_v12 = vunpack.c.l.bf16 %v811_v5  ;;  %v775_v13 = vunpack.c.h.bf16 %v811_v5  ;;  %v297_v16 = vmul.f32 %v895_v2, %v742_v6  ;;  %v298_v17 = vmul.f32 %v895_v2, %v743_v7  ;;  %v816_v47 = vld [vmem:[%s890_s26 + $0x68] sm:$0xff]  }
  0x12   : > { %v790_v14 = vunpack.c.l.bf16 %v815_v11  ;;  %v791_v15 = vunpack.c.h.bf16 %v815_v11  ;;  %v305_v18 = vmul.f32 %v895_v2, %v758_v9  ;;  %v306_v19 = vmul.f32 %v895_v2, %v759_v10 }
  0x13   : > { %v313_v20 = vmul.f32 %v895_v2, %v774_v12  ;;  %v314_v21 = vmul.f32 %v895_v2, %v775_v13  ;;  %v333_v24 = vadd.f32 %v903_v8, %v297_v16  ;;  %v334_v25 = vadd.f32 %v903_v8, %v298_v17 }
  0x14   : > { %v321_v22 = vmul.f32 %v895_v2, %v790_v14  ;;  %v322_v23 = vmul.f32 %v895_v2, %v791_v15  ;;  %v341_v26 = vadd.f32 %v903_v8, %v305_v18  ;;  %v342_v27 = vadd.f32 %v903_v8, %v306_v19  ;;  %v805_v14 = vld [vmem:[%s890_s26 + $0x10] sm:$0xff]  }
  0x15   : > { %v349_v28 = vadd.f32 %v903_v8, %v313_v20  ;;  %v350_v29 = vadd.f32 %v903_v8, %v314_v21  ;;  %v365_v33 = vmax.f32 %v333_v24, 0.0  ;;  %v366_v34 = vmax.f32 %v334_v25, 0.0  ;;  %v809_v15 = vld [vmem:[%s890_s26 + $0x30] sm:$0xff]  }
  0x16   : > { %v357_v30 = vadd.f32 %v903_v8, %v321_v22  ;;  %v358_v31 = vadd.f32 %v903_v8, %v322_v23  ;;  %v373_v35 = vmax.f32 %v341_v26, 0.0  ;;  %v374_v36 = vmax.f32 %v342_v27, 0.0  ;;  %v813_v20 = vld [vmem:[%s890_s26 + $0x50] sm:$0xff]  }
  0x17   : > { %v381_v38 = vmax.f32 %v349_v28, 0.0  ;;  %v382_v39 = vmax.f32 %v350_v29, 0.0  ;;  %v397_v43 = vpack.c.bf16 %v366_v34, %v365_v33  ;;  %v299_v52 = vmul.f32 %v895_v2, %v746_v45  ;;  %v817_v21 = vld [vmem:[%s890_s26 + $0x70] sm:$0xff]  }
  0x18   : > { %v389_v40 = vmax.f32 %v357_v30, 0.0  ;;  %v390_v41 = vmax.f32 %v358_v31, 0.0  ;;  %v401_v44 = vpack.c.bf16 %v374_v36, %v373_v35  ;;  %v300_v53 = vmul.f32 %v895_v2, %v747_v46 }
  0x19   : > { %v405_v48 = vpack.c.bf16 %v382_v39, %v381_v38  ;;  %722 = vmatmul.msk.bf16.vlgmr.msra.gmra.mxu0 %vm418_vm1, %v397_v43  ;;  %v778_v54 = vunpack.c.l.bf16 %v812_v42  ;;  %v779_v55 = vunpack.c.h.bf16 %v812_v42  ;;  %v307_v56 = vmul.f32 %v895_v2, %v762_v50 }
  0x1a   : > { %v409_v49 = vpack.c.bf16 %v390_v41, %v389_v40  ;;  %726 = vmatmul.msk.bf16.vlgmr.msra.gmra.mxu1 %vm418_vm1, %v401_v44  ;;  %v308_v57 = vmul.f32 %v895_v2, %v763_v51  ;;  %v794_v58 = vunpack.c.l.bf16 %v816_v47  ;;  %v795_v59 = vunpack.c.h.bf16 %v816_v47 }
  0x1b   : > { %730 = vmatmul.msk.bf16.vlgmr.msra.gmra.mxu2 %vm418_vm1, %v405_v48  ;;  %v315_v60 = vmul.f32 %v895_v2, %v778_v54  ;;  %v316_v61 = vmul.f32 %v895_v2, %v779_v55  ;;  %v335_v0 = vadd.f32 %v903_v8, %v299_v52  ;;  %v336_v1 = vadd.f32 %v903_v8, %v300_v53 }
  0x1c   : > { %734 = vmatmul.msk.bf16.vlgmr.msra.gmra.mxu3 %vm418_vm1, %v409_v49  ;;  %v323_v62 = vmul.f32 %v895_v2, %v794_v58  ;;  %v324_v63 = vmul.f32 %v895_v2, %v795_v59  ;;  %v343_v3 = vadd.f32 %v903_v8, %v307_v56  ;;  %v344_v4 = vadd.f32 %v903_v8, %v308_v57  ;;  %v806_v56 = vld [vmem:[%s890_s26 + $0x18] sm:$0xff]  }
  0x1d   : > { %v351_v5 = vadd.f32 %v903_v8, %v315_v60  ;;  %v352_v6 = vadd.f32 %v903_v8, %v316_v61  ;;  %v367_v10 = vmax.f32 %v335_v0, 0.0  ;;  %v368_v11 = vmax.f32 %v336_v1, 0.0  ;;  %v810_v59 = vld [vmem:[%s890_s26 + $0x38] sm:$0xff]  }
  0x1e   : > { %v359_v7 = vadd.f32 %v903_v8, %v323_v62  ;;  %v360_v9 = vadd.f32 %v903_v8, %v324_v63  ;;  %v375_v12 = vmax.f32 %v343_v3, 0.0  ;;  %v376_v13 = vmax.f32 %v344_v4, 0.0  ;;  %v814_v60 = vld [vmem:[%s890_s26 + $0x58] sm:$0xff]  }
  0x1f   : > { %v383_v16 = vmax.f32 %v351_v5, 0.0  ;;  %v384_v17 = vmax.f32 %v352_v6, 0.0  ;;  %v750_v22 = vunpack.c.l.bf16 %v805_v14  ;;  %v751_v23 = vunpack.c.h.bf16 %v805_v14  ;;  %v818_v61 = vld [vmem:[%s890_s26 + $0x78] sm:$0xff]  }
  0x20   : > { %v391_v18 = vmax.f32 %v359_v7, 0.0  ;;  %v392_v19 = vmax.f32 %v360_v9, 0.0  ;;  %v766_v24 = vunpack.c.l.bf16 %v809_v15  ;;  %v767_v25 = vunpack.c.h.bf16 %v809_v15 }
  0x21   : > { %v398_v26 = vpack.c.bf16 %v368_v11, %v367_v10  ;;  %v402_v27 = vpack.c.bf16 %v376_v13, %v375_v12  ;;  %v782_v28 = vunpack.c.l.bf16 %v813_v20  ;;  %v783_v29 = vunpack.c.h.bf16 %v813_v20 }
  0x22   : > { %v406_v30 = vpack.c.bf16 %v384_v17, %v383_v16  ;;  %v410_v31 = vpack.c.bf16 %v392_v19, %v391_v18  ;;  %v798_v32 = vunpack.c.l.bf16 %v817_v21  ;;  %v799_v33 = vunpack.c.h.bf16 %v817_v21 }
  0x23   : > { %v301_v34 = vmul.f32 %v895_v2, %v750_v22  ;;  %v302_v35 = vmul.f32 %v895_v2, %v751_v23  ;;  %v309_v36 = vmul.f32 %v895_v2, %v766_v24  ;;  %v310_v37 = vmul.f32 %v895_v2, %v767_v25 }
  0x24   : > { %v317_v38 = vmul.f32 %v895_v2, %v782_v28  ;;  %v318_v39 = vmul.f32 %v895_v2, %v783_v29  ;;  %v325_v40 = vmul.f32 %v895_v2, %v798_v32  ;;  %v326_v41 = vmul.f32 %v895_v2, %v799_v33 }
  0x25   : > { %v337_v42 = vadd.f32 %v903_v8, %v301_v34  ;;  %v338_v43 = vadd.f32 %v903_v8, %v302_v35  ;;  %v345_v44 = vadd.f32 %v903_v8, %v309_v36  ;;  %v346_v45 = vadd.f32 %v903_v8, %v310_v37 }
  0x26   : > { %v353_v46 = vadd.f32 %v903_v8, %v317_v38  ;;  %v354_v47 = vadd.f32 %v903_v8, %v318_v39  ;;  %v361_v48 = vadd.f32 %v903_v8, %v325_v40  ;;  %v362_v49 = vadd.f32 %v903_v8, %v326_v41 }
  0x27   : > { %v369_v50 = vmax.f32 %v337_v42, 0.0  ;;  %v370_v51 = vmax.f32 %v338_v43, 0.0  ;;  %v377_v52 = vmax.f32 %v345_v44, 0.0  ;;  %v378_v53 = vmax.f32 %v346_v45, 0.0 }
  0x28   : > { %v385_v54 = vmax.f32 %v353_v46, 0.0  ;;  %v386_v55 = vmax.f32 %v354_v47, 0.0  ;;  %v393_v57 = vmax.f32 %v361_v48, 0.0  ;;  %v394_v58 = vmax.f32 %v362_v49, 0.0 }
  0x29   : > { %723 = vmatmul.msk.bf16.gmra.mxu0 %vm418_vm1, %v398_v26  ;;  %v399_v62 = vpack.c.bf16 %v370_v51, %v369_v50  ;;  %v403_v63 = vpack.c.bf16 %v378_v53, %v377_v52  ;;  %v754_v0 = vunpack.c.l.bf16 %v806_v56  ;;  %v755_v1 = vunpack.c.h.bf16 %v806_v56 }
  0x2a   : > { %727 = vmatmul.msk.bf16.gmra.mxu1 %vm418_vm1, %v402_v27  ;;  %v407_v3 = vpack.c.bf16 %v386_v55, %v385_v54  ;;  %v770_v4 = vunpack.c.l.bf16 %v810_v59  ;;  %v771_v5 = vunpack.c.h.bf16 %v810_v59  ;;  %v786_v6 = vunpack.c.l.bf16 %v814_v60 }
  0x2b   : > { %731 = vmatmul.msk.bf16.gmra.mxu2 %vm418_vm1, %v406_v30  ;;  %v411_v7 = vpack.c.bf16 %v394_v58, %v393_v57  ;;  %v787_v9 = vunpack.c.h.bf16 %v814_v60  ;;  %v802_v10 = vunpack.c.l.bf16 %v818_v61  ;;  %v803_v11 = vunpack.c.h.bf16 %v818_v61 }
  0x2c   : > { %735 = vmatmul.msk.bf16.gmra.mxu3 %vm418_vm1, %v410_v31  ;;  %v303_v12 = vmul.f32 %v895_v2, %v754_v0  ;;  %v304_v13 = vmul.f32 %v895_v2, %v755_v1  ;;  %v311_v14 = vmul.f32 %v895_v2, %v770_v4  ;;  %v312_v15 = vmul.f32 %v895_v2, %v771_v5 }
  0x2d   : > { %v319_v16 = vmul.f32 %v895_v2, %v786_v6  ;;  %v320_v17 = vmul.f32 %v895_v2, %v787_v9  ;;  %v327_v18 = vmul.f32 %v895_v2, %v802_v10  ;;  %v328_v19 = vmul.f32 %v895_v2, %v803_v11 }
  0x2e   : > { %v339_v20 = vadd.f32 %v903_v8, %v303_v12  ;;  %v340_v21 = vadd.f32 %v903_v8, %v304_v13  ;;  %v347_v22 = vadd.f32 %v903_v8, %v311_v14  ;;  %v348_v23 = vadd.f32 %v903_v8, %v312_v15 }
  0x2f   : > { %v355_v24 = vadd.f32 %v903_v8, %v319_v16  ;;  %v356_v25 = vadd.f32 %v903_v8, %v320_v17  ;;  %v363_v26 = vadd.f32 %v903_v8, %v327_v18  ;;  %v364_v27 = vadd.f32 %v903_v8, %v328_v19  ;;  %v1001_v8 = vld [vmem:[%s1113_s4] ss:$0 sm:$0xff] }
  0x30   : > { %v371_v28 = vmax.f32 %v339_v20, 0.0  ;;  %v372_v29 = vmax.f32 %v340_v21, 0.0  ;;  %v379_v30 = vmax.f32 %v347_v22, 0.0  ;;  %v380_v2 = vmax.f32 %v348_v23, 0.0 }
  0x31   : > { %v387_v31 = vmax.f32 %v355_v24, 0.0  ;;  %v388_v32 = vmax.f32 %v356_v25, 0.0  ;;  %v395_v33 = vmax.f32 %v363_v26, 0.0  ;;  %v396_v34 = vmax.f32 %v364_v27, 0.0 }
  0x32   : > { %v400_v35 = vpack.c.bf16 %v372_v29, %v371_v28  ;;  %v404_v36 = vpack.c.bf16 %v380_v2, %v379_v30 }
  0x33   : > { %v408_v37 = vpack.c.bf16 %v388_v32, %v387_v31  ;;  %v412_v38 = vpack.c.bf16 %v396_v34, %v395_v33 }
  0x39   : > { %724 = vmatmul.msk.bf16.gmra.mxu0 %vm418_vm1, %v399_v62 }
  0x3a   : > { %728 = vmatmul.msk.bf16.gmra.mxu1 %vm418_vm1, %v403_v63 }
  0x3b   : > { %732 = vmatmul.msk.bf16.gmra.mxu2 %vm418_vm1, %v407_v3 }
  0x3c   : > { %736 = vmatmul.msk.bf16.gmra.mxu3 %vm418_vm1, %v411_v7 }
  0x49   : > { %725 = vmatmul.msk.bf16.gmra.mxu0 %vm418_vm1, %v400_v35 }
  0x4a   : > { %729 = vmatmul.msk.bf16.gmra.mxu1 %vm418_vm1, %v404_v36 }
  0x4b   : > { %733 = vmatmul.msk.bf16.gmra.mxu2 %vm418_vm1, %v408_v37 }
  0x4c   : > { %737 = vmatmul.msk.bf16.gmra.mxu3 %vm418_vm1, %v412_v38 }
  0x96   : > { %v480_v39 = vpop.f32.mrf.mxu0 }
  0x97   : > { %v500_v40 = vpop.f32.mrf.mxu1  ;;  %v481_v41 = vadd.f32 %v1001_v8, %v480_v39 }
  0x98   : > { %v501_v42 = vadd.f32 %v1001_v8, %v500_v40 }
  0x99   : > { %v560_v43 = vmax.f32 %v481_v41, 0.0 }
  0x9a   : > { %v568_v44 = vmax.f32 %v501_v42, 0.0 }
  0x9b   : > { %v592_v45 = vpack.c.bf16 %v560_v43, %v560_v43 }
  0x9c   : > { %v600_v46 = vpack.c.bf16 %v568_v44, %v568_v44 }
  0x9d   : > { %625 = vst.msk [vmem:[%s1010_s10] sm:$0xf] %vm624_vm2, %v592_v45 }
  0x9e   : > { %v520_v47 = vpop.f32.mrf.mxu2  ;;  %633 = vst.msk [vmem:[%s1010_s10 + $0x20] sm:$0xf] %vm624_vm2, %v600_v46  ;;  %v482_v51 = vpop.f32.mrf.mxu0 }
  0x9f   : > { %v540_v48 = vpop.f32.mrf.mxu3  ;;  %v521_v49 = vadd.f32 %v1001_v8, %v520_v47  ;;  %v502_v52 = vpop.f32.mrf.mxu1  ;;  %v483_v53 = vadd.f32 %v1001_v8, %v482_v51 }
  0xa0   : > { %v541_v50 = vadd.f32 %v1001_v8, %v540_v48  ;;  %v503_v54 = vadd.f32 %v1001_v8, %v502_v52 }
  0xa1   : > { %v576_v55 = vmax.f32 %v521_v49, 0.0  ;;  %v561_v57 = vmax.f32 %v483_v53, 0.0 }
  0xa2   : > { %v584_v56 = vmax.f32 %v541_v50, 0.0  ;;  %v569_v58 = vmax.f32 %v503_v54, 0.0 }
  0xa3   : > { %v608_v59 = vpack.c.bf16 %v576_v55, %v576_v55  ;;  %v593_v61 = vpack.c.bf16 %v561_v57, %v561_v57 }
  0xa4   : > { %v616_v60 = vpack.c.bf16 %v584_v56, %v584_v56  ;;  %v601_v62 = vpack.c.bf16 %v569_v58, %v569_v58 }
  0xa5   : > { %641 = vst.msk [vmem:[%s1010_s10 + $0x40] sm:$0xf] %vm624_vm2, %v608_v59 }
  0xa6   : > { %649 = vst.msk [vmem:[%s1010_s10 + $0x60] sm:$0xf] %vm624_vm2, %v616_v60  ;;  %v522_v63 = vpop.f32.mrf.mxu2  ;;  %v485_v4 = vpop.f32.mrf.mxu0 }
  0xa7   : > { %v542_v0 = vpop.f32.mrf.mxu3  ;;  %626 = vst.msk [vmem:[%s1010_s10 + $0x4] sm:$0xf] %vm624_vm2, %v593_v61  ;;  %v523_v1 = vadd.f32 %v1001_v8, %v522_v63  ;;  %v505_v5 = vpop.f32.mrf.mxu1  ;;  %v486_v6 = vadd.f32 %v1001_v8, %v485_v4 }
  0xa8   : > { %v543_v3 = vadd.f32 %v1001_v8, %v542_v0  ;;  %634 = vst.msk [vmem:[%s1010_s10 + $0x24] sm:$0xf] %vm624_vm2, %v601_v62  ;;  %v506_v7 = vadd.f32 %v1001_v8, %v505_v5 }
  0xa9   : > { %v577_v9 = vmax.f32 %v523_v1, 0.0  ;;  %v562_v11 = vmax.f32 %v486_v6, 0.0 }
  0xaa   : > { %v585_v10 = vmax.f32 %v543_v3, 0.0  ;;  %v570_v12 = vmax.f32 %v506_v7, 0.0 }
  0xab   : > { %v609_v13 = vpack.c.bf16 %v577_v9, %v577_v9  ;;  %v594_v15 = vpack.c.bf16 %v562_v11, %v562_v11 }
  0xac   : > { %v617_v14 = vpack.c.bf16 %v585_v10, %v585_v10  ;;  %v602_v16 = vpack.c.bf16 %v570_v12, %v570_v12 }
  0xad   : > { %642 = vst.msk [vmem:[%s1010_s10 + $0x44] sm:$0xf] %vm624_vm2, %v609_v13 }
  0xae   : > { %650 = vst.msk [vmem:[%s1010_s10 + $0x64] sm:$0xf] %vm624_vm2, %v617_v14  ;;  %v525_v17 = vpop.f32.mrf.mxu2  ;;  %v487_v21 = vpop.f32.mrf.mxu0 }
  0xaf   : > { %v545_v18 = vpop.f32.mrf.mxu3  ;;  %627 = vst.msk [vmem:[%s1010_s10 + $0x8] sm:$0xf] %vm624_vm2, %v594_v15  ;;  %v526_v19 = vadd.f32 %v1001_v8, %v525_v17  ;;  %v507_v22 = vpop.f32.mrf.mxu1  ;;  %v488_v23 = vadd.f32 %v1001_v8, %v487_v21 }
  0xb0   : > { %v546_v20 = vadd.f32 %v1001_v8, %v545_v18  ;;  %635 = vst.msk [vmem:[%s1010_s10 + $0x28] sm:$0xf] %vm624_vm2, %v602_v16  ;;  %v508_v24 = vadd.f32 %v1001_v8, %v507_v22 }
  0xb1   : > { %v578_v25 = vmax.f32 %v526_v19, 0.0  ;;  %v563_v27 = vmax.f32 %v488_v23, 0.0 }
  0xb2   : > { %v586_v26 = vmax.f32 %v546_v20, 0.0  ;;  %v571_v28 = vmax.f32 %v508_v24, 0.0 }
  0xb3   : > { %v610_v29 = vpack.c.bf16 %v578_v25, %v578_v25  ;;  %v595_v2 = vpack.c.bf16 %v563_v27, %v563_v27 }
  0xb4   : > { %v618_v30 = vpack.c.bf16 %v586_v26, %v586_v26  ;;  %v603_v31 = vpack.c.bf16 %v571_v28, %v571_v28 }
  0xb5   : > { %643 = vst.msk [vmem:[%s1010_s10 + $0x48] sm:$0xf] %vm624_vm2, %v610_v29 }
  0xb6   : > { %651 = vst.msk [vmem:[%s1010_s10 + $0x68] sm:$0xf] %vm624_vm2, %v618_v30  ;;  %v527_v32 = vpop.f32.mrf.mxu2  ;;  %v490_v36 = vpop.f32.mrf.mxu0 }
  0xb7   : > { %v547_v33 = vpop.f32.mrf.mxu3  ;;  %628 = vst.msk [vmem:[%s1010_s10 + $0xc] sm:$0xf] %vm624_vm2, %v595_v2  ;;  %v528_v34 = vadd.f32 %v1001_v8, %v527_v32  ;;  %v510_v37 = vpop.f32.mrf.mxu1  ;;  %v491_v38 = vadd.f32 %v1001_v8, %v490_v36 }
  0xb8   : > { %v548_v35 = vadd.f32 %v1001_v8, %v547_v33  ;;  %636 = vst.msk [vmem:[%s1010_s10 + $0x2c] sm:$0xf] %vm624_vm2, %v603_v31  ;;  %v511_v39 = vadd.f32 %v1001_v8, %v510_v37 }
  0xb9   : > { %v579_v40 = vmax.f32 %v528_v34, 0.0  ;;  %v564_v42 = vmax.f32 %v491_v38, 0.0 }
  0xba   : > { %v587_v41 = vmax.f32 %v548_v35, 0.0  ;;  %v572_v43 = vmax.f32 %v511_v39, 0.0 }
  0xbb   : > { %v611_v44 = vpack.c.bf16 %v579_v40, %v579_v40  ;;  %v596_v46 = vpack.c.bf16 %v564_v42, %v564_v42 }
  0xbc   : > { %v619_v45 = vpack.c.bf16 %v587_v41, %v587_v41  ;;  %v604_v47 = vpack.c.bf16 %v572_v43, %v572_v43 }
  0xbd   : > { %644 = vst.msk [vmem:[%s1010_s10 + $0x4c] sm:$0xf] %vm624_vm2, %v611_v44 }
  0xbe   : > { %652 = vst.msk [vmem:[%s1010_s10 + $0x6c] sm:$0xf] %vm624_vm2, %v619_v45  ;;  %v530_v48 = vpop.f32.mrf.mxu2  ;;  %v492_v52 = vpop.f32.mrf.mxu0 }
  0xbf   : > { %v550_v49 = vpop.f32.mrf.mxu3  ;;  %629 = vst.msk [vmem:[%s1010_s10 + $0x10] sm:$0xf] %vm624_vm2, %v596_v46  ;;  %v531_v50 = vadd.f32 %v1001_v8, %v530_v48  ;;  %v512_v53 = vpop.f32.mrf.mxu1  ;;  %v493_v54 = vadd.f32 %v1001_v8, %v492_v52 }
  0xc0   : > { %v551_v51 = vadd.f32 %v1001_v8, %v550_v49  ;;  %637 = vst.msk [vmem:[%s1010_s10 + $0x30] sm:$0xf] %vm624_vm2, %v604_v47  ;;  %v513_v55 = vadd.f32 %v1001_v8, %v512_v53 }
  0xc1   : > { %v580_v56 = vmax.f32 %v531_v50, 0.0  ;;  %v565_v58 = vmax.f32 %v493_v54, 0.0 }
  0xc2   : > { %v588_v57 = vmax.f32 %v551_v51, 0.0  ;;  %v573_v59 = vmax.f32 %v513_v55, 0.0 }
  0xc3   : > { %v612_v60 = vpack.c.bf16 %v580_v56, %v580_v56  ;;  %v597_v62 = vpack.c.bf16 %v565_v58, %v565_v58 }
  0xc4   : > { %v620_v61 = vpack.c.bf16 %v588_v57, %v588_v57  ;;  %v605_v63 = vpack.c.bf16 %v573_v59, %v573_v59 }
  0xc5   : > { %645 = vst.msk [vmem:[%s1010_s10 + $0x50] sm:$0xf] %vm624_vm2, %v612_v60 }
  0xc6   : > { %653 = vst.msk [vmem:[%s1010_s10 + $0x70] sm:$0xf] %vm624_vm2, %v620_v61  ;;  %v532_v0 = vpop.f32.mrf.mxu2  ;;  %v495_v5 = vpop.f32.mrf.mxu0 }
  0xc7   : > { %v552_v1 = vpop.f32.mrf.mxu3  ;;  %630 = vst.msk [vmem:[%s1010_s10 + $0x14] sm:$0xf] %vm624_vm2, %v597_v62  ;;  %v533_v3 = vadd.f32 %v1001_v8, %v532_v0  ;;  %v515_v6 = vpop.f32.mrf.mxu1  ;;  %v496_v7 = vadd.f32 %v1001_v8, %v495_v5 }
  0xc8   : > { %v553_v4 = vadd.f32 %v1001_v8, %v552_v1  ;;  %638 = vst.msk [vmem:[%s1010_s10 + $0x34] sm:$0xf] %vm624_vm2, %v605_v63  ;;  %v516_v9 = vadd.f32 %v1001_v8, %v515_v6 }
  0xc9   : > { %v581_v10 = vmax.f32 %v533_v3, 0.0  ;;  %v566_v12 = vmax.f32 %v496_v7, 0.0 }
  0xca   : > { %v589_v11 = vmax.f32 %v553_v4, 0.0  ;;  %v574_v13 = vmax.f32 %v516_v9, 0.0 }
  0xcb   : > { %v613_v14 = vpack.c.bf16 %v581_v10, %v581_v10  ;;  %v598_v16 = vpack.c.bf16 %v566_v12, %v566_v12 }
  0xcc   : > { %v621_v15 = vpack.c.bf16 %v589_v11, %v589_v11  ;;  %v606_v17 = vpack.c.bf16 %v574_v13, %v574_v13 }
  0xcd   : > { %646 = vst.msk [vmem:[%s1010_s10 + $0x54] sm:$0xf] %vm624_vm2, %v613_v14 }
  0xce   : > { %654 = vst.msk [vmem:[%s1010_s10 + $0x74] sm:$0xf] %vm624_vm2, %v621_v15  ;;  %v535_v18 = vpop.f32.mrf.mxu2  ;;  %v497_v22 = vpop.f32.mrf.mxu0 }
  0xcf   : > { %v555_v19 = vpop.f32.mrf.mxu3  ;;  %631 = vst.msk [vmem:[%s1010_s10 + $0x18] sm:$0xf] %vm624_vm2, %v598_v16  ;;  %v536_v20 = vadd.f32 %v1001_v8, %v535_v18  ;;  %v517_v23 = vpop.f32.mrf.mxu1  ;;  %v498_v24 = vadd.f32 %v1001_v8, %v497_v22 }
  0xd0   : > { %v556_v21 = vadd.f32 %v1001_v8, %v555_v19  ;;  %639 = vst.msk [vmem:[%s1010_s10 + $0x38] sm:$0xf] %vm624_vm2, %v606_v17  ;;  %v518_v25 = vadd.f32 %v1001_v8, %v517_v23 }
  0xd1   : > { %v582_v26 = vmax.f32 %v536_v20, 0.0  ;;  %v567_v28 = vmax.f32 %v498_v24, 0.0 }
  0xd2   : > { %v590_v27 = vmax.f32 %v556_v21, 0.0  ;;  %v575_v29 = vmax.f32 %v518_v25, 0.0 }
  0xd3   : > { %v614_v30 = vpack.c.bf16 %v582_v26, %v582_v26  ;;  %v599_v31 = vpack.c.bf16 %v567_v28, %v567_v28 }
  0xd4   : > { %v622_v2 = vpack.c.bf16 %v590_v27, %v590_v27  ;;  %v607_v32 = vpack.c.bf16 %v575_v29, %v575_v29 }
  0xd5   : > { %647 = vst.msk [vmem:[%s1010_s10 + $0x58] sm:$0xf] %vm624_vm2, %v614_v30 }
  0xd6   : > { %655 = vst.msk [vmem:[%s1010_s10 + $0x78] sm:$0xf] %vm624_vm2, %v622_v2  ;;  %v537_v33 = vpop.f32.mrf.mxu2 }
  0xd7   : > { %v557_v34 = vpop.f32.mrf.mxu3  ;;  %632 = vst.msk [vmem:[%s1010_s10 + $0x1c] sm:$0xf] %vm624_vm2, %v599_v31  ;;  %v538_v35 = vadd.f32 %v1001_v8, %v537_v33 }
  0xd8   : > { %v558_v36 = vadd.f32 %v1001_v8, %v557_v34  ;;  %640 = vst.msk [vmem:[%s1010_s10 + $0x3c] sm:$0xf] %vm624_vm2, %v607_v32 }
  0xd9   : > { %v583_v37 = vmax.f32 %v538_v35, 0.0 }
  0xda   : > { %v591_v38 = vmax.f32 %v558_v36, 0.0 }
  0xdb   : > { %v615_v39 = vpack.c.bf16 %v583_v37, %v583_v37 }
  0xdc   : > { %v623_v40 = vpack.c.bf16 %v591_v38, %v591_v38 }
  0xdd   : > { %648 = vst.msk [vmem:[%s1010_s10 + $0x5c] sm:$0xf] %vm624_vm2, %v615_v39 }
  0xde   : > { %656 = vst.msk [vmem:[%s1010_s10 + $0x7c] sm:$0xf] %vm624_vm2, %v623_v40 }
  0xdf PF: > { %s15_s18 = sadd.s32 1, %s839_s18  }
  0xe0   : > { %p12_p4 = scmp.ge.s32.totalorder %s15_s18, 4  }
  0xe2   :  { %14 = sbr.rel (!%p12_p4) target bundleno = 1 (0x1), region = 70 }

</bundles_post_ra>
